<compile_context>
chip_gen: v5e
topology: v5e:2x2
jax: 0.10.0
libtpu: 0.0.40
codegen_flags: <defaults>
</compile_context>

<pallas_src>
import functools
import inspect

import jax
import jax.numpy as jnp
import numpy as np
from jax import lax
from jax.experimental import pallas as pl
from jax.experimental.pallas import tpu as pltpu


_MIN_SQNORM = 1e-10  # == (1e-5)^2: matches the reference clamp norm >= 1e-5

# Single-buffering for grid-invariant weights (falls back to default double-buffering
# on JAX versions without BlockSpec.pipeline_mode / pl.Buffered).
_HAS_BUFFERED = (
    hasattr(pl, "Buffered")
    and "pipeline_mode" in inspect.signature(pl.BlockSpec).parameters
)


def _resident_spec(block_shape, index_map):
    """BlockSpec for a weight whose block index never changes (VMEM-resident)."""
    if _HAS_BUFFERED:
        return pl.BlockSpec(block_shape, index_map, pipeline_mode=pl.Buffered(1))
    return pl.BlockSpec(block_shape, index_map)


def _artanh(x):
    # geoopt/pvae Artanh: clamp to (-1+1e-5, 1-1e-5), then 0.5*(log(1+x)-log(1-x))
    x = jnp.clip(x, -1.0 + 1e-5, 1.0 - 1e-5)
    return 0.5 * (jnp.log1p(x) - jnp.log1p(-x))


def _decmob_kernel(c, z_ref, wmob_t_ref, wh_t_ref, bh_ref, wout_t_ref, bout_ref,
                   mu_ref, h_ref):
    sqrt_c = c ** 0.5
    inv_sqrt_c = 1.0 / sqrt_c                                            # folded constant

    # --- Mobius/log/hidden chain: computed ONCE per batch tile, cached in VMEM ---
    @pl.when(pl.program_id(1) == 0)
    def _compute_h():
        x = z_ref[...].astype(jnp.float32)                               # (TB, D)

        # MobiusLayer: mobius_matvec(W_mob, x) on the Poincare ball
        x_ss = jnp.maximum(jnp.sum(x * x, axis=-1, keepdims=True), _MIN_SQNORM)
        inv_x_norm = lax.rsqrt(x_ss)                                     # EUP
        x_norm = x_ss * inv_x_norm                                       # sqrt via multiply
        mx = jnp.dot(x, wmob_t_ref[...],
                     preferred_element_type=jnp.float32)                 # (TB, H), f32 MXU
        mx_ss_raw = jnp.sum(mx * mx, axis=-1, keepdims=True)
        all_zero = mx_ss_raw == 0.0                                      # == all(mx == 0)
        mx_ss = jnp.maximum(mx_ss_raw, _MIN_SQNORM)
        inv_mx_norm = lax.rsqrt(mx_ss)
        mx_norm = mx_ss * inv_mx_norm
        res_c = (jnp.tanh(mx_norm * inv_x_norm * _artanh(sqrt_c * x_norm))
                 * mx * (inv_mx_norm * inv_sqrt_c))
        h = jnp.where(all_zero, 0.0, res_c)

        # LogZero: Riemannian log map at the origin
        h_ss = jnp.maximum(jnp.sum(h * h, axis=-1, keepdims=True), _MIN_SQNORM)
        inv_h_norm = lax.rsqrt(h_ss)
        h_norm = h_ss * inv_h_norm
        h = h * (inv_h_norm * inv_sqrt_c) * _artanh(sqrt_c * h_norm)

        # non_lin (ReLU)
        h = jnp.maximum(h, 0.0)

        # extra hidden layers: Linear + ReLU (weights pre-transposed, bf16)
        for l in range(wh_t_ref.shape[0]):
            h = jnp.maximum(
                jnp.dot(h.astype(jnp.bfloat16), wh_t_ref[l],
                        preferred_element_type=jnp.float32) + bh_ref[l],
                0.0)
        h_ref[...] = h

    # --- fc31: one lane-dense output tile of the P axis (reuses cached h) ---
    mu_ref[...] = (jnp.dot(h_ref[...].astype(jnp.bfloat16), wout_t_ref[...],
                           preferred_element_type=jnp.float32)
                   + bout_ref[...]).astype(mu_ref.dtype)


def prepare_decmob_params(params, data_size, *, block_p=2048):
    """One-time weight preparation (hoisted out of the per-call path).

    Returns (wmob_t, wh_t, bh_f, wout_t, bout_p):
      wmob_t : (D, H)        f32   (Mobius matvec stays f32)
      wh_t   : (L, H, H)     bf16  (pre-transposed hidden weights)
      bh_f   : (L, 1, H)     f32
      wout_t : (H, P_pad)    bf16  (pre-transposed, lane-padded output weights)
      bout_p : (1, P_pad)    f32
    """
    wmob, wh, bh, wout, bout = params
    H = wmob.shape[0]
    P = int(np.prod(data_size))

    P_pad = 128 * pl.cdiv(P, 128)
    TP = min(block_p, P_pad)
    P_pad = TP * pl.cdiv(P_pad, TP)

    wmob_t = wmob.T.astype(jnp.float32)                                    # (D, H)
    wh_t = jnp.transpose(wh, (0, 2, 1)).astype(jnp.bfloat16)               # (L, H, H)
    bh_f = bh.astype(jnp.float32)                                          # (L, 1, H)
    wout_t = jnp.zeros((H, P_pad), jnp.bfloat16).at[:, :P].set(
        wout.T.astype(jnp.bfloat16))                                       # (H, P_pad)
    bout_p = jnp.zeros((1, P_pad), jnp.float32).at[:, :P].set(
        bout.reshape(1, P).astype(jnp.float32))                            # (1, P_pad)
    return wmob_t, wh_t, bh_f, wout_t, bout_p


def decmob_forward(z, prepared, data_size, c, *, block_b=512, block_p=2048,
                   out_dtype=jnp.float32):
    """DecMob forward pass. Returns mu with shape (B, *data_size)."""
    wmob_t, wh_t, bh_f, wout_t, bout_p = prepared
    B, D = z.shape
    H = wmob_t.shape[1]
    P = int(np.prod(data_size))
    P_pad = wout_t.shape[1]
    num_extra = wh_t.shape[0]
    assert num_extra >= 1, "expects num_hidden_layers >= 2"

    # Lane-dense output tiling (multiples of 128 -> unmasked vst stores).
    TP = min(block_p, P_pad)
    assert P_pad % TP == 0, "use the same block_p for prepare_decmob_params and forward"

    # Sublane-aligned batch tiling; keep >= 2 batch tiles when B > 8 so the "parallel"
    # batch axis actually feeds both v7x TensorCores.
    TB = min(block_b, 8 * pl.cdiv(B, 8))
    if B > 8 and pl.cdiv(B, TB) < 2:
        TB = 8 * pl.cdiv(pl.cdiv(B, 2), 8)
    B_pad = TB * pl.cdiv(B, TB)

    z_in = z.astype(jnp.float32)
    if B_pad != B:
        # zero rows stay finite through the clamped Mobius/log maps; sliced off below
        z_in = jnp.zeros((B_pad, D), jnp.float32).at[:B].set(z_in)

    # VMEM budget: resident (single-buffered) weights + double-buffered streamed tiles
    # + the h scratch; raise the scoped limit (v5e default is only 16 MiB) with headroom.
    out_isize = jnp.dtype(out_dtype).itemsize
    vmem_est = (
        wmob_t.size * wmob_t.dtype.itemsize
        + wh_t.size * wh_t.dtype.itemsize
        + bh_f.size * bh_f.dtype.itemsize
        + 2 * (TB * D * 4)                      # z tiles
        + 2 * (H * TP * 2 + TP * 4)             # wout / bout tiles
        + 2 * (TB * TP * out_isize)             # output tiles
        + TB * H * 4                            # h scratch
    )
    vmem_limit = int(min(max(2 * vmem_est, 32 * 1024 * 1024), 64 * 1024 * 1024))

    grid = (B_pad // TB, P_pad // TP)
    kernel = functools.partial(_decmob_kernel, float(c))
    mu_flat = pl.pallas_call(
        kernel,
        out_shape=jax.ShapeDtypeStruct((B_pad, P_pad), out_dtype),
        grid=grid,
        in_specs=[
            pl.BlockSpec((TB, D), lambda i, j: (i, 0)),
            # Grid-invariant weights: constant block index (VMEM-resident) and, where
            # supported, single-buffered to halve their VMEM footprint.
            _resident_spec((D, H), lambda i, j: (0, 0)),
            _resident_spec((num_extra, H, H), lambda i, j: (0, 0, 0)),
            _resident_spec((num_extra, 1, H), lambda i, j: (0, 0, 0)),
            # Output-projection tiles stream along j (inner axis); with the h-cache the
            # expensive chain above is NOT recomputed per j tile.
            pl.BlockSpec((H, TP), lambda i, j: (0, j)),
            pl.BlockSpec((1, TP), lambda i, j: (0, j)),
        ],
        out_specs=pl.BlockSpec((TB, TP), lambda i, j: (i, j)),
        scratch_shapes=[pltpu.VMEM((TB, H), jnp.float32)],   # cached h, persists over j
        compiler_params=pltpu.CompilerParams(
            # j carries the h-cache -> must be "arbitrary"; only batch is megacore-split.
            dimension_semantics=("parallel", "arbitrary"),
            vmem_limit_bytes=vmem_limit),
    )(z_in, wmob_t, wh_t, bh_f, wout_t, bout_p)

    return mu_flat[:B, :P].reshape((B,) + tuple(data_size))


def dec_bernouilli_wrapper_forward(z, prepared, data_size, c, **kw):
    """DecBernouilliWrapper.forward: returns (1.0, mu) — the constant is host-side."""
    mu = decmob_forward(z, prepared, data_size, c, **kw)
    return jnp.asarray(1.0, dtype=jnp.float32), mu


def decmob_reference(z, params, data_size, c, *, bf16_hidden_dots=False):
    """Pure-JAX reference mirroring the PyTorch decoder.

    With bf16_hidden_dots=True the hidden/output Linear layers use bf16 MXU inputs with
    f32 accumulation (the Mobius matvec is always f32), mirroring the kernel's numerics.
    """
    wmob, wh, bh, wout, bout = params
    sqrt_c = c ** 0.5

    def dot(a, w_t):
        if bf16_hidden_dots:
            return jnp.dot(a.astype(jnp.bfloat16), w_t.astype(jnp.bfloat16),
                           preferred_element_type=jnp.float32)
        return jnp.dot(a, w_t, preferred_element_type=jnp.float32)

    x = z.astype(jnp.float32)
    x_norm = jnp.sqrt(jnp.maximum(jnp.sum(x * x, -1, keepdims=True), _MIN_SQNORM))
    mx = jnp.dot(x, wmob.T, preferred_element_type=jnp.float32)
    mx_norm = jnp.sqrt(jnp.maximum(jnp.sum(mx * mx, -1, keepdims=True), _MIN_SQNORM))
    res_c = (jnp.tanh(mx_norm / x_norm * _artanh(sqrt_c * x_norm))
             * mx / (mx_norm * sqrt_c))
    cond = jnp.all(mx == 0, axis=-1, keepdims=True)
    h = jnp.where(cond, 0.0, res_c)
    h_norm = jnp.sqrt(jnp.maximum(jnp.sum(h * h, -1, keepdims=True), _MIN_SQNORM))
    h = h / h_norm / sqrt_c * _artanh(sqrt_c * h_norm)
    h = jnp.maximum(h, 0.0)
    for l in range(wh.shape[0]):
        h = jnp.maximum(dot(h, wh[l].T) + bh[l], 0.0)
    mu = (dot(h, wout.T) + bout).reshape((z.shape[0],) + tuple(data_size))
    return mu


def init_params(key, coord_dim, hidden_dim, num_hidden_layers, data_size):
    """Deterministic parameter init (PyTorch Linear-style uniform bounds)."""
    P = int(np.prod(data_size))
    num_extra = num_hidden_layers - 1
    ks = jax.random.split(key, 5)
    b_mob = 1.0 / np.sqrt(coord_dim)
    b_hid = 1.0 / np.sqrt(hidden_dim)
    wmob = jax.random.uniform(ks[0], (hidden_dim, coord_dim), jnp.float32, -b_mob, b_mob)
    wh = jax.random.uniform(ks[1], (num_extra, hidden_dim, hidden_dim), jnp.float32, -b_hid, b_hid)
    bh = jax.random.uniform(ks[2], (num_extra, 1, hidden_dim), jnp.float32, -b_hid, b_hid)
    wout = jax.random.uniform(ks[3], (P, hidden_dim), jnp.float32, -b_hid, b_hid)
    bout = jax.random.uniform(ks[4], (1, P), jnp.float32, -b_hid, b_hid)
    return wmob, wh, bh, wout, bout


if __name__ == "__main__":
    # Small synthetic config consistent with the module:
    batch = 8
    coord_dim = 8            # manifold.coord_dim (latent dim)
    hidden_dim = 32
    num_hidden_layers = 2    # -> 1 extra Linear+ReLU layer
    data_size = (1, 8, 16)   # C, H, W  (prod = 128, lane-dense output)
    curvature = 0.7          # Poincare-ball curvature c

    key = jax.random.PRNGKey(0)
    k_z, k_p = jax.random.split(key)
    z = 0.1 * jax.random.normal(k_z, (batch, coord_dim), jnp.float32)  # points in the ball
    params = init_params(k_p, coord_dim, hidden_dim, num_hidden_layers, data_size)

    # One-time weight preparation (transpose / cast / lane-pad) outside the call path.
    prepared = prepare_decmob_params(params, data_size)
    jax.block_until_ready(prepared)

    one, mu = dec_bernouilli_wrapper_forward(z, prepared, data_size, curvature)
    jax.block_until_ready((one, mu))

    assert mu.shape == (batch,) + data_size
    assert float(one) == 1.0

    # Check against a reference that mirrors the kernel numerics (bf16 hidden/output dots).
    mu_mirror = decmob_reference(z, params, data_size, curvature, bf16_hidden_dots=True)
    np.testing.assert_allclose(np.asarray(mu), np.asarray(mu_mirror), rtol=1e-4, atol=1e-4)

    # Semantic sanity check against the full-f32 PyTorch-faithful reference.
    mu_f32 = decmob_reference(z, params, data_size, curvature, bf16_hidden_dots=False)
    np.testing.assert_allclose(np.asarray(mu), np.asarray(mu_f32), rtol=2e-2, atol=2e-2)

    print("KERNEL_OK")
</pallas_src>

<mosaic_0001>
module attributes {stable_mosaic.version = 11 : i64} {
  func.func @_decmob_kernel(%arg0: i32, %arg1: i32, %arg2: memref<8x8xf32, #tpu.memory_space<vmem>>, %arg3: memref<8x32xf32, #tpu.memory_space<vmem>>, %arg4: memref<1x32x32xbf16, #tpu.memory_space<vmem>>, %arg5: memref<1x1x32xf32, #tpu.memory_space<vmem>>, %arg6: memref<32x128xbf16, #tpu.memory_space<vmem>>, %arg7: memref<1x128xf32, #tpu.memory_space<vmem>>, %arg8: memref<8x128xf32, #tpu.memory_space<vmem>>, %arg9: memref<8x32xf32, #tpu.memory_space<vmem>>) attributes {dimension_semantics = [#tpu.dimension_semantics<parallel>, #tpu.dimension_semantics<arbitrary>], iteration_bounds = array<i64: 1, 1>, scalar_prefetch = 0 : i64, scratch_operands = 1 : i64, tpu.core_type = #tpu.core_type<tc>, window_params = [{transform_indices = @transform_0, window_bounds = array<i64: 8, 8>}, {pipeline_mode = #tpu.pipeline_mode<synchronous>, transform_indices = @transform_1, window_bounds = array<i64: 8, 32>}, {pipeline_mode = #tpu.pipeline_mode<synchronous>, transform_indices = @transform_2, window_bounds = array<i64: 1, 32, 32>}, {pipeline_mode = #tpu.pipeline_mode<synchronous>, transform_indices = @transform_3, window_bounds = array<i64: 1, 1, 32>}, {transform_indices = @transform_4, window_bounds = array<i64: 32, 128>}, {transform_indices = @transform_5, window_bounds = array<i64: 1, 128>}, {transform_indices = @transform_6, window_bounds = array<i64: 8, 128>}]} {
    %c0_i32 = arith.constant 0 : i32
    %0 = arith.cmpi eq, %arg1, %c0_i32 : i32
    %1 = arith.extui %0 : i1 to i32
    %c0_i32_0 = arith.constant 0 : i32
    %2 = arith.cmpi ne, %1, %c0_i32_0 : i32
    scf.if %2 {
      %c0_8 = arith.constant 0 : index
      %c0_9 = arith.constant 0 : index
      %11 = vector.load %arg2[%c0_8, %c0_9] : memref<8x8xf32, #tpu.memory_space<vmem>>, vector<8x8xf32>
      %12 = arith.mulf %11, %11 : vector<8x8xf32>
      %cst_10 = arith.constant dense<0.000000e+00> : vector<8xf32>
      %13 = vector.multi_reduction <add>, %12, %cst_10 [1] : vector<8x8xf32> to vector<8xf32>
      %14 = vector.shape_cast %13 : vector<8xf32> to vector<8x1xf32>
      %cst_11 = arith.constant 1.000000e-10 : f32
      %15 = vector.broadcast %cst_11 : f32 to vector<8x1xf32>
      %16 = arith.maximumf %14, %15 : vector<8x1xf32>
      %17 = math.rsqrt %16 : vector<8x1xf32>
      %18 = arith.mulf %16, %17 : vector<8x1xf32>
      %c0_12 = arith.constant 0 : index
      %c0_13 = arith.constant 0 : index
      %19 = vector.load %arg3[%c0_12, %c0_13] : memref<8x32xf32, #tpu.memory_space<vmem>>, vector<8x32xf32>
      %cst_14 = arith.constant dense<0.000000e+00> : vector<8x32xf32>
      %20 = tpu.matmul %11, %19, %cst_14 {dimension_numbers = #tpu.dot_dimension_numbers<[1], [0], [0], [1], [0, 0, 1, 1], [], []>} : vector<8x8xf32>, vector<8x32xf32>, vector<8x32xf32> -> vector<8x32xf32>
      %21 = arith.mulf %20, %20 : vector<8x32xf32>
      %cst_15 = arith.constant dense<0.000000e+00> : vector<8xf32>
      %22 = vector.multi_reduction <add>, %21, %cst_15 [1] : vector<8x32xf32> to vector<8xf32>
      %23 = vector.shape_cast %22 : vector<8xf32> to vector<8x1xf32>
      %cst_16 = arith.constant 0.000000e+00 : f32
      %24 = vector.broadcast %cst_16 : f32 to vector<8x1xf32>
      %25 = arith.cmpf oeq, %23, %24 : vector<8x1xf32>
      %cst_17 = arith.constant 1.000000e-10 : f32
      %26 = vector.broadcast %cst_17 : f32 to vector<8x1xf32>
      %27 = arith.maximumf %23, %26 : vector<8x1xf32>
      %28 = math.rsqrt %27 : vector<8x1xf32>
      %29 = arith.mulf %27, %28 : vector<8x1xf32>
      %30 = arith.mulf %29, %17 : vector<8x1xf32>
      %cst_18 = arith.constant 8.366600e-01 : f32
      %31 = vector.broadcast %cst_18 : f32 to vector<8x1xf32>
      %32 = arith.mulf %31, %18 : vector<8x1xf32>
      %cst_19 = arith.constant -0.999989986 : f32
      %cst_20 = arith.constant 0.999989986 : f32
      %33 = vector.broadcast %cst_19 : f32 to vector<8x1xf32>
      %34 = arith.maximumf %33, %32 : vector<8x1xf32>
      %35 = vector.broadcast %cst_20 : f32 to vector<8x1xf32>
      %36 = arith.minimumf %35, %34 : vector<8x1xf32>
      %37 = math.log1p %36 : vector<8x1xf32>
      %cst_21 = arith.constant 0.000000e+00 : f32
      %38 = vector.broadcast %cst_21 : f32 to vector<8x1xf32>
      %39 = arith.subf %38, %36 : vector<8x1xf32>
      %40 = math.log1p %39 : vector<8x1xf32>
      %41 = arith.subf %37, %40 : vector<8x1xf32>
      %cst_22 = arith.constant 5.000000e-01 : f32
      %42 = vector.broadcast %cst_22 : f32 to vector<8x1xf32>
      %43 = arith.mulf %42, %41 : vector<8x1xf32>
      %44 = arith.mulf %30, %43 : vector<8x1xf32>
      %45 = math.tanh %44 : vector<8x1xf32>
      %46 = vector.broadcast %45 : vector<8x1xf32> to vector<8x32xf32>
      %47 = arith.mulf %46, %20 : vector<8x32xf32>
      %cst_23 = arith.constant 1.19522858 : f32
      %48 = vector.broadcast %cst_23 : f32 to vector<8x1xf32>
      %49 = arith.mulf %28, %48 : vector<8x1xf32>
      %50 = vector.broadcast %49 : vector<8x1xf32> to vector<8x32xf32>
      %51 = arith.mulf %47, %50 : vector<8x32xf32>
      %cst_24 = arith.constant 0.000000e+00 : f32
      %52 = vector.shape_cast %25 : vector<8x1xi1> to vector<8x1xi1>
      %53 = vector.broadcast %52 : vector<8x1xi1> to vector<8x32xi1>
      %54 = vector.broadcast %cst_24 : f32 to vector<8x32xf32>
      %55 = arith.select %53, %54, %51 : vector<8x32xi1>, vector<8x32xf32>
      %56 = arith.mulf %55, %55 : vector<8x32xf32>
      %cst_25 = arith.constant dense<0.000000e+00> : vector<8xf32>
      %57 = vector.multi_reduction <add>, %56, %cst_25 [1] : vector<8x32xf32> to vector<8xf32>
      %58 = vector.shape_cast %57 : vector<8xf32> to vector<8x1xf32>
      %cst_26 = arith.constant 1.000000e-10 : f32
      %59 = vector.broadcast %cst_26 : f32 to vector<8x1xf32>
      %60 = arith.maximumf %58, %59 : vector<8x1xf32>
      %61 = math.rsqrt %60 : vector<8x1xf32>
      %62 = arith.mulf %60, %61 : vector<8x1xf32>
      %cst_27 = arith.constant 1.19522858 : f32
      %63 = vector.broadcast %cst_27 : f32 to vector<8x1xf32>
      %64 = arith.mulf %61, %63 : vector<8x1xf32>
      %65 = vector.broadcast %64 : vector<8x1xf32> to vector<8x32xf32>
      %66 = arith.mulf %55, %65 : vector<8x32xf32>
      %cst_28 = arith.constant 8.366600e-01 : f32
      %67 = vector.broadcast %cst_28 : f32 to vector<8x1xf32>
      %68 = arith.mulf %67, %62 : vector<8x1xf32>
      %cst_29 = arith.constant -0.999989986 : f32
      %cst_30 = arith.constant 0.999989986 : f32
      %69 = vector.broadcast %cst_29 : f32 to vector<8x1xf32>
      %70 = arith.maximumf %69, %68 : vector<8x1xf32>
      %71 = vector.broadcast %cst_30 : f32 to vector<8x1xf32>
      %72 = arith.minimumf %71, %70 : vector<8x1xf32>
      %73 = math.log1p %72 : vector<8x1xf32>
      %cst_31 = arith.constant 0.000000e+00 : f32
      %74 = vector.broadcast %cst_31 : f32 to vector<8x1xf32>
      %75 = arith.subf %74, %72 : vector<8x1xf32>
      %76 = math.log1p %75 : vector<8x1xf32>
      %77 = arith.subf %73, %76 : vector<8x1xf32>
      %cst_32 = arith.constant 5.000000e-01 : f32
      %78 = vector.broadcast %cst_32 : f32 to vector<8x1xf32>
      %79 = arith.mulf %78, %77 : vector<8x1xf32>
      %80 = vector.broadcast %79 : vector<8x1xf32> to vector<8x32xf32>
      %81 = arith.mulf %66, %80 : vector<8x32xf32>
      %cst_33 = arith.constant 0.000000e+00 : f32
      %82 = vector.broadcast %cst_33 : f32 to vector<8x32xf32>
      %83 = arith.maximumf %81, %82 : vector<8x32xf32>
      %84 = arith.truncf %83 : vector<8x32xf32> to vector<8x32xbf16>
      %c0_34 = arith.constant 0 : index
      %c0_35 = arith.constant 0 : index
      %c0_36 = arith.constant 0 : index
      %85 = vector.load %arg4[%c0_34, %c0_35, %c0_36] : memref<1x32x32xbf16, #tpu.memory_space<vmem>>, vector<1x32x32xbf16>
      %86 = vector.shape_cast %85 : vector<1x32x32xbf16> to vector<32x32xbf16>
      %cst_37 = arith.constant dense<0.000000e+00> : vector<8x32xf32>
      %87 = tpu.matmul %84, %86, %cst_37 {dimension_numbers = #tpu.dot_dimension_numbers<[1], [0], [0], [1], [0, 0, 1, 1], [], []>} : vector<8x32xbf16>, vector<32x32xbf16>, vector<8x32xf32> -> vector<8x32xf32>
      %c0_38 = arith.constant 0 : index
      %c0_39 = arith.constant 0 : index
      %c0_40 = arith.constant 0 : index
      %88 = vector.load %arg5[%c0_38, %c0_39, %c0_40] : memref<1x1x32xf32, #tpu.memory_space<vmem>>, vector<1x1x32xf32>
      %89 = vector.shape_cast %88 : vector<1x1x32xf32> to vector<1x32xf32>
      %90 = vector.broadcast %89 : vector<1x32xf32> to vector<8x32xf32>
      %91 = arith.addf %87, %90 : vector<8x32xf32>
      %cst_41 = arith.constant 0.000000e+00 : f32
      %92 = vector.broadcast %cst_41 : f32 to vector<8x32xf32>
      %93 = arith.maximumf %91, %92 : vector<8x32xf32>
      %c0_42 = arith.constant 0 : index
      %c0_43 = arith.constant 0 : index
      %94 = vector.load %arg9[%c0_42, %c0_43] : memref<8x32xf32, #tpu.memory_space<vmem>>, vector<8x32xf32>
      tpu.vector_store %arg9[%c0_42, %c0_43], %93 {strides = array<i32>} : memref<8x32xf32, #tpu.memory_space<vmem>>, vector<8x32xf32>,
    } else {
    }
    %c0 = arith.constant 0 : index
    %c0_1 = arith.constant 0 : index
    %3 = vector.load %arg9[%c0, %c0_1] : memref<8x32xf32, #tpu.memory_space<vmem>>, vector<8x32xf32>
    %4 = arith.truncf %3 : vector<8x32xf32> to vector<8x32xbf16>
    %c0_2 = arith.constant 0 : index
    %c0_3 = arith.constant 0 : index
    %5 = vector.load %arg6[%c0_2, %c0_3] : memref<32x128xbf16, #tpu.memory_space<vmem>>, vector<32x128xbf16>
    %cst = arith.constant dense<0.000000e+00> : vector<8x128xf32>
    %6 = tpu.matmul %4, %5, %cst {dimension_numbers = #tpu.dot_dimension_numbers<[1], [0], [0], [1], [0, 0, 1, 1], [], []>} : vector<8x32xbf16>, vector<32x128xbf16>, vector<8x128xf32> -> vector<8x128xf32>
    %c0_4 = arith.constant 0 : index
    %c0_5 = arith.constant 0 : index
    %7 = vector.load %arg7[%c0_4, %c0_5] : memref<1x128xf32, #tpu.memory_space<vmem>>, vector<1x128xf32>
    %8 = vector.broadcast %7 : vector<1x128xf32> to vector<8x128xf32>
    %9 = arith.addf %6, %8 : vector<8x128xf32>
    %c0_6 = arith.constant 0 : index
    %c0_7 = arith.constant 0 : index
    %10 = vector.load %arg8[%c0_6, %c0_7] : memref<8x128xf32, #tpu.memory_space<vmem>>, vector<8x128xf32>
    tpu.vector_store %arg8[%c0_6, %c0_7], %9 {strides = array<i32>} : memref<8x128xf32, #tpu.memory_space<vmem>>, vector<8x128xf32>,
    return
  }
  func.func @transform_0(%arg0: i32, %arg1: i32) -> (i32, i32) {
    %c0_i32 = arith.constant 0 : i32
    %c0_i32_0 = arith.constant 0 : i32
    return %arg0, %c0_i32 : i32, i32
  }
  func.func @transform_1(%arg0: i32, %arg1: i32) -> (i32, i32) {
    %c0_i32 = arith.constant 0 : i32
    %c0_i32_0 = arith.constant 0 : i32
    %c0_i32_1 = arith.constant 0 : i32
    return %c0_i32, %c0_i32_0 : i32, i32
  }
  func.func @transform_2(%arg0: i32, %arg1: i32) -> (i32, i32, i32) {
    %c0_i32 = arith.constant 0 : i32
    %c0_i32_0 = arith.constant 0 : i32
    %c0_i32_1 = arith.constant 0 : i32
    %c0_i32_2 = arith.constant 0 : i32
    return %c0_i32, %c0_i32_0, %c0_i32_1 : i32, i32, i32
  }
  func.func @transform_3(%arg0: i32, %arg1: i32) -> (i32, i32, i32) {
    %c0_i32 = arith.constant 0 : i32
    %c0_i32_0 = arith.constant 0 : i32
    %c0_i32_1 = arith.constant 0 : i32
    %c0_i32_2 = arith.constant 0 : i32
    return %c0_i32, %c0_i32_0, %c0_i32_1 : i32, i32, i32
  }
  func.func @transform_4(%arg0: i32, %arg1: i32) -> (i32, i32) {
    %c0_i32 = arith.constant 0 : i32
    %c0_i32_0 = arith.constant 0 : i32
    return %c0_i32, %arg1 : i32, i32
  }
  func.func @transform_5(%arg0: i32, %arg1: i32) -> (i32, i32) {
    %c0_i32 = arith.constant 0 : i32
    %c0_i32_0 = arith.constant 0 : i32
    return %c0_i32, %arg1 : i32, i32
  }
  func.func @transform_6(%arg0: i32, %arg1: i32) -> (i32, i32) {
    %c0_i32 = arith.constant 0 : i32
    return %arg0, %arg1 : i32, i32
  }
}

</mosaic_0001>

<bundles_post_ra>
// kernel: tpu_custom_call.1
= control target key start
LH: loop header
LB: loop body
LE: loop exit
PB: predicated region body
PF: predicated region fallthrough
CT: control target
= control target key end

     0   :  { %11 = vsyncpa [#allocation4], 0  ;;  %s569_s0 = inlined_call_operand.hbm [shape: f32[8,8], index: 0, kind: input, shape index: {}]   ;;  %s570_s1 = inlined_call_operand.hbm [shape: f32[8,32], index: 1, kind: input, shape index: {}]   ;;  %s571_s2 = inlined_call_operand.hbm [shape: bf16[1,32,32], index: 2, kind: input, shape index: {}]   ;;  %s572_s3 = inlined_call_operand.vmem [shape: f32[1,1,32], index: 3, kind: input, shape index: {}]   ;;  %s573_s4 = inlined_call_operand.hbm [shape: bf16[32,128], index: 4, kind: input, shape index: {}]   ;;  %s574_s5 = inlined_call_operand.vmem [shape: f32[1,128], index: 5, kind: input, shape index: {}]   ;;  %s575_s6 = inlined_call_operand.hbm [shape: f32[8,128], index: 6, kind: output, shape index: {}]  }
   0x1   :  { %12 = vsyncpa [#allocation7], 0 }
   0x2   :  { %13 = vsyncpa [#allocation10], 0  ;;  %s31_s23 = sshll.u32 %s570_s1, 4  ;;  %s32_s23 = int_to_ptr.hbm [resolvable:$true] %s31_s23 }
   0x3   :  { %14 = vsyncpa [#allocation5], 0  ;;  %s501_s24 = smov [#allocation6]   ;;  %s20_s28 = sshll.u32 %s569_s0, 4  ;;  %s21_s28 = int_to_ptr.hbm [resolvable:$true] %s20_s28 }
   0x4   :  { %s33_s25 = sshll.u32 %s501_s24, 4  ;;  %s502_s29 = smov [#allocation3]   ;;  %s34_s25 = int_to_ptr.vmem [resolvable:$true] %s33_s25 }
   0x5   :  { %36 = dma.hbm_to_vmem [thread:$0]  %s32_s23, 128, %s34_s25, [#allocation7]  }
   0x6   :  { %s22_s30 = sshll.u32 %s502_s29, 4  ;;  %s41_s9 = sshll.u32 %s571_s2, 4  ;;  %s23_s30 = int_to_ptr.vmem [resolvable:$true] %s22_s30  ;;  %s42_s9 = int_to_ptr.hbm [resolvable:$true] %s41_s9 }
   0x7   :  { %25 = dma.hbm_to_vmem [thread:$0]  %s21_s28, 128, %s23_s30, [#allocation4]  }
   0x8   :  { %s503_s1 = smov [#allocation8]   ;;  %s56_s13 = sshll.u32 %s573_s4, 4  ;;  %s57_s13 = int_to_ptr.hbm [resolvable:$true] %s56_s13 }
   0x9   :  { %s43_s10 = sshll.u32 %s503_s1, 4  ;;  %s504_s14 = smov 64   ;;  %s44_s10 = int_to_ptr.vmem [resolvable:$true] %s43_s10 }
   0xa   :  { %s505_s0 = smov 4   ;;  %s506_s15 = smov [#allocation9]  }
   0xb   :  { %49 = dma.hbm_to_vmem [thread:$0]  %s42_s9, 256, %s44_s10, [#allocation7], %s504_s14, %s504_s14, %s505_s0  }
   0xc   :  { %s58_s16 = sshll.u32 %s506_s15, 4  ;;  %s59_s16 = int_to_ptr.vmem [resolvable:$true] %s58_s16 }
   0xd   :  { %64 = dma.hbm_to_vmem [thread:$0]  %s57_s13, 256, %s59_s16, [#allocation10], %s504_s14, %s504_s14, %s505_s0  }
   0xe   :  { %493 = dma.done.wait [#allocation4], 128  }
   0xf   :  { %494 = vsyncadd [#allocation4], 4294967168 }
  0x10   :  { %495 = dma.done.wait [#allocation7], 384  }
  0x11   :  { %496 = vsyncadd [#allocation7], 4294966912 }
  0x12   :  { %497 = dma.done.wait [#allocation10], 256  }
  0x13   :  { %498 = vsyncadd [#allocation10], 4294967040  ;;  %vm90_vm0 = vcmask 64512   ;;  %v106_v0 = vld [vmem:[#allocation6] sm:$0xff]  ;;  %v88_v1 = vld [vmem:[#allocation3] sm:$0xff]  ;;  %vm131_vm1 = vcmask 261120  }
  0x14   :  { %125 = vmatpush.msra.mxu0 %v106_v0  ;;  %v89_v2 = vmul.f32 %v88_v1, %v88_v1  ;;  %v345_v57 = vld [vmem:[#allocation8 + $0x8] sm:$0xff]  ;;  %v344_v58 = vld [vmem:[#allocation8] sm:$0xff]  ;;  %s507_s19 = smov [#allocation11]  }
  0x15   :  { %323 = vmatmul.msk.f32.vlgmr.msra.gmra.mxu0 %vm90_vm0, %v88_v1  ;;  %255 = vmatpush.bf16.msra.mxu1 %v345_v57  ;;  %s309_s20 = sshll.u32 %s507_s19, 4  ;;  %s310_s20 = int_to_ptr.vmem [resolvable:$true] %s309_s20 }
  0x16   :  { %v91_v3 = vsel %vm90_vm0, %v89_v2, 0.0 }
  0x17   :  { %92 = vadd.xlane.f32.xlu0 %v91_v3 }
  0x19   :  { %256 = vmatpush.bf16.msra.mxu1 %v344_v58 }
  0x8a   :  { %v93_v7 = vpop.xlane.xlu0 %92 }
  0x8b   :  { %v94_v8 = vmax.f32 %v93_v7, 1e-10 }
  0x8d   :  { %357 = vrsqrt.f32 %v94_v8  ;;  %vm101_vm2 = vweird.f32 %v94_v8 }
  0x92   :  { %v127_v4 = vpop.f32.mrf.mxu0 }
  0x93   :  { %v130_v5 = vmul.f32 %v127_v4, %v127_v4  ;;  %v358_v9 = vpop.eup %357 }
  0x94   :  { %v96_v10 = vmul.f32 %v358_v9, %v94_v8  ;;  %vm102_vm3 = vweird.f32 %v358_v9 }
  0x95   :  { %v132_v6 = vsel %vm131_vm1, %v130_v5, 0.0  ;;  %vm103_vm4 = vmor %vm101_vm2, %vm102_vm3 }
  0x96   :  { %133 = vadd.xlane.f32.xlu0 %v132_v6  ;;  %v97_v11 = vmul.f32 %v358_v9, %v96_v10 }
  0x98   :  { %v98_v12 = vmul.f32 0.5, %v97_v11 }
  0x9a   :  { %v99_v13 = vsub.f32 1.5, %v98_v12 }
  0x9c   :  { %v100_v14 = vmul.f32 %v358_v9, %v99_v13 }
  0x9e   :  { %v104_v15 = vsel %vm103_vm4, %v358_v9, %v100_v14 }
  0x9f   :  { %v105_v16 = vmul.f32 %v104_v15, %v94_v8 }
  0xa1   :  { %v149_v17 = vmul.f32 0.83666, %v105_v16 }
  0xa3   :  { %v324_v18 = vclamps-f32 %v149_v17, 0.99999 }
  0xa5   :  { %v161_v19 = vsub.f32 0.0, %v324_v18  ;;  %v152_v20 = vadd.f32 1.0, %v324_v18  ;;  %v155_v24 = vmul.f32 -0.5, %v324_v18  ;;  %v158_v31 = vand.u32 2147483647, %v324_v18 }
  0xa7   :  { %v162_v21 = vadd.f32 1.0, %v161_v19  ;;  %359 = vlog2.f32 %v152_v20  ;;  %v165_v25 = vmul.f32 -0.5, %v161_v19  ;;  %v156_v27 = vadd.f32 1.0, %v155_v24 }
  0xa8   :  { %v168_v32 = vand.u32 2147483647, %v161_v19  ;;  %vm159_vm5 = vcmp.lt.f32.partialorder %v158_v31, 0.0004427343  ;;  %v347_v31 = vld [vmem:[#allocation9 + $0x8] sm:$0xff] }
  0xa9   :  { %361 = vlog2.f32 %v162_v21  ;;  %v166_v29 = vadd.f32 1.0, %v165_v25  ;;  %v157_v34 = vmul.f32 %v324_v18, %v156_v27  ;;  %296 = vmatpush.bf16.msra.mxu2 %v347_v31 }
  0xaa   :  { %vm169_vm6 = vcmp.lt.f32.partialorder %v168_v32, 0.0004427343  ;;  %v346_v32 = vld [vmem:[#allocation9] sm:$0xff] }
  0xab   :  { %v167_v37 = vmul.f32 %v166_v29, %v161_v19 }
  0xad   :  { %v360_v26 = vpop.eup %359  ;;  %297 = vmatpush.bf16.msra.mxu2 %v346_v32 }
  0xae   :  { %v154_v35 = vmul.f32 0.6931472, %v360_v26 }
  0xaf   :  { %v362_v28 = vpop.eup %361 }
  0xb0   :  { %v164_v36 = vmul.f32 0.6931472, %v362_v28  ;;  %v160_v40 = vsel %vm159_vm5, %v157_v34, %v154_v35 }
  0xb2   :  { %v170_v41 = vsel %vm169_vm6, %v167_v37, %v164_v36 }
  0xb3   :  { %v171_v44 = vsub.f32 %v160_v40, %v170_v41  ;;  %v356_v40 = vld [vmem:[%s574_s5] ss:$0 sm:$0xff] }
  0xb5   :  { %v172_v47 = vmul.f32 0.5, %v171_v44 }
 0x109   :  { %v134_v22 = vpop.xlane.xlu0 %133 }
 0x10a   :  { %v136_v23 = vmax.f32 %v134_v22, 1e-10  ;;  %vm135_vm10 = vcmp.eq.f32.partialorder %v134_v22, 0.0 }
 0x10c   :  { %363 = vrsqrt.f32 %v136_v23  ;;  %vm143_vm8 = vweird.f32 %v136_v23 }
 0x112   :  { %v364_v30 = vpop.eup %363 }
 0x113   :  { %v138_v33 = vmul.f32 %v364_v30, %v136_v23  ;;  %vm144_vm7 = vweird.f32 %v364_v30 }
 0x114   :  { %vm145_vm9 = vmor %vm143_vm8, %vm144_vm7 }
 0x115   :  { %v139_v38 = vmul.f32 %v364_v30, %v138_v33  ;;  %v355_v33 = vld [vmem:[%s572_s3] ss:$0 sm:$0xff]  ;;  %s311_s3 = sshll.u32 %s575_s6, 4  ;;  %s312_s3 = int_to_ptr.hbm [resolvable:$true] %s311_s3 }
 0x117   :  { %v140_v39 = vmul.f32 0.5, %v139_v38 }
 0x119   :  { %v141_v42 = vsub.f32 1.5, %v140_v39 }
 0x11b   :  { %v142_v43 = vmul.f32 %v364_v30, %v141_v42 }
 0x11d   :  { %v146_v45 = vsel %vm145_vm9, %v364_v30, %v142_v43 }
 0x11e   :  { %v147_v46 = vmul.f32 %v146_v45, %v136_v23  ;;  %v176_v52 = vmul.f32 1.1952286, %v146_v45 }
 0x120   :  { %v148_v48 = vmul.f32 %v147_v46, %v104_v15 }
 0x122   :  { %v173_v49 = vmul.f32 %v172_v47, %v148_v48 }
 0x124   :  { %365 = vtanh.f32 %v173_v49 }
 0x12a   :  { %v366_v50 = vpop.eup %365 }
 0x12b   :  { %v175_v51 = vmul.f32 %v366_v50, %v127_v4 }
 0x12d   :  { %v177_v53 = vmul.f32 %v176_v52, %v175_v51 }
 0x12f   :  { %v180_v54 = vsel %vm135_vm10, 0.0, %v177_v53 }
 0x130   :  { %v181_v55 = vmul.f32 %v180_v54, %v180_v54 }
 0x132   :  { %v182_v56 = vsel %vm131_vm1, %v181_v55, 0.0 }
 0x133   :  { %183 = vadd.xlane.f32.xlu1 %v182_v56 }
 0x1a6   :  { %v184_v59 = vpop.xlane.xlu1 %183 }
 0x1a7   :  { %v185_v60 = vmax.f32 %v184_v59, 1e-10 }
 0x1a9   :  { %367 = vrsqrt.f32 %v185_v60  ;;  %vm192_vm12 = vweird.f32 %v185_v60 }
 0x1af   :  { %v368_v61 = vpop.eup %367 }
 0x1b0   :  { %v187_v62 = vmul.f32 %v368_v61, %v185_v60  ;;  %vm193_vm11 = vweird.f32 %v368_v61 }
 0x1b1   :  { %vm194_vm13 = vmor %vm192_vm12, %vm193_vm11 }
 0x1b2   :  { %v188_v63 = vmul.f32 %v368_v61, %v187_v62 }
 0x1b4   :  { %v189_v0 = vmul.f32 0.5, %v188_v63 }
 0x1b6   :  { %v190_v1 = vsub.f32 1.5, %v189_v0 }
 0x1b8   :  { %v191_v2 = vmul.f32 %v368_v61, %v190_v1 }
 0x1ba   :  { %v195_v3 = vsel %vm194_vm13, %v368_v61, %v191_v2 }
 0x1bb   :  { %v196_v4 = vmul.f32 %v195_v3, %v185_v60  ;;  %v197_v22 = vmul.f32 1.1952286, %v195_v3 }
 0x1bd   :  { %v199_v5 = vmul.f32 0.83666, %v196_v4  ;;  %v198_v26 = vmul.f32 %v197_v22, %v180_v54 }
 0x1bf   :  { %v325_v6 = vclamps-f32 %v199_v5, 0.99999 }
 0x1c1   :  { %v202_v7 = vadd.f32 1.0, %v325_v6  ;;  %v211_v8 = vsub.f32 0.0, %v325_v6  ;;  %v205_v10 = vmul.f32 -0.5, %v325_v6  ;;  %v208_v15 = vand.u32 2147483647, %v325_v6 }
 0x1c3   :  { %369 = vlog2.f32 %v202_v7  ;;  %v212_v9 = vadd.f32 1.0, %v211_v8  ;;  %v215_v11 = vmul.f32 -0.5, %v211_v8  ;;  %v206_v12 = vadd.f32 1.0, %v205_v10 }
 0x1c4   :  { %v218_v16 = vand.u32 2147483647, %v211_v8  ;;  %vm209_vm14 = vcmp.lt.f32.partialorder %v208_v15, 0.0004427343 }
 0x1c5   :  { %371 = vlog2.f32 %v212_v9  ;;  %v216_v13 = vadd.f32 1.0, %v215_v11  ;;  %v207_v19 = vmul.f32 %v325_v6, %v206_v12 }
 0x1c6   :  { %vm219_vm15 = vcmp.lt.f32.partialorder %v218_v16, 0.0004427343 }
 0x1c7   :  { %v217_v21 = vmul.f32 %v216_v13, %v211_v8 }
 0x1c9   :  { %v370_v14 = vpop.eup %369 }
 0x1ca   :  { %v204_v17 = vmul.f32 0.6931472, %v370_v14 }
 0x1cb   :  { %v372_v18 = vpop.eup %371 }
 0x1cc   :  { %v214_v20 = vmul.f32 0.6931472, %v372_v18  ;;  %v210_v23 = vsel %vm209_vm14, %v207_v19, %v204_v17 }
 0x1ce   :  { %v220_v24 = vsel %vm219_vm15, %v217_v21, %v214_v20 }
 0x1cf   :  { %v221_v25 = vsub.f32 %v210_v23, %v220_v24 }
 0x1d1   :  { %v222_v27 = vmul.f32 0.5, %v221_v25 }
 0x1d3   :  { %v223_v28 = vmul.f32 %v222_v27, %v198_v26 }
 0x1d5   :  { %v224_v29 = vmax.f32 %v223_v28, 0.0 }
 0x1d7   :  { %v225_v30 = vpack.c.bf16 %v224_v29, %v224_v29 }
 0x1d9   :  { %334 = vmatmul.msk.bf16.vlgmr.msra.gmra.mxu1 %vm131_vm1, %v225_v30 }
 0x256   :  { %v258_v34 = vpop.f32.mrf.mxu1 }
 0x257   :  { %v259_v35 = vadd.f32 %v355_v33, %v258_v34 }
 0x259   :  { %v262_v36 = vmax.f32 %v259_v35, 0.0 }
 0x25b   :  { %263 = vst.msk [vmem:[#allocation2] sm:$0xff] %vm131_vm1, %v262_v36 }
 0x25e   :  { %v260_v37 = vpop.f32.mrf.mxu1 }
 0x262   :  { %v264_v38 = vld [vmem:[#allocation2] sm:$0xff] }
 0x263   :  { %v265_v39 = vpack.c.bf16 %v264_v38, %v264_v38 }
 0x265   :  { %343 = vmatmul.msk.bf16.vlgmr.msra.gmra.mxu2 %vm131_vm1, %v265_v39 }
 0x2e8   :  { %v299_v41 = vpop.f32.mrf.mxu2 }
 0x2e9   :  { %v300_v42 = vadd.f32 %v356_v40, %v299_v41 }
 0x2eb   :  { %303 = vst [vmem:[#allocation11] sm:$0xff] %v300_v42 }
 0x2ec   :  { %314 = dma.vmem_to_hbm [thread:$0]  %s310_s20, 128, %s312_s3, [#allocation5]  }
 0x2f0   :  { %v301_v43 = vpop.f32.mrf.mxu2 }
 0x2f1   :  { %499 = dma.done.wait [#allocation5], 128  }
 0x2f2   :  { %500 = vsyncadd [#allocation5], 4294967168 }
 0x2f3   :  { %319 = vsyncpa [#allocation4], 1 }
 0x2f4   :  { %320 = vsyncpa [#allocation7], 1 }
 0x2f5   :  { %321 = vsyncpa [#allocation10], 1 }
 0x2f6   :  { %322 = vsyncpa [#allocation5], 1 }

</bundles_post_ra>
